<compile_context>
chip_gen: v7x
topology: tpu7x:2x2x1
jax: 0.10.0
libtpu: 0.0.40
codegen_flags: <defaults>
</compile_context>

<pallas_src>
import jax
import jax.numpy as jnp
from jax import lax
from jax.experimental import pallas as pl
from jax.experimental.pallas import tpu as pltpu


# ---------------------------------------------------------------------------
# Fused kernel: one pixel-block (flattened batch*point) per grid step.
# ---------------------------------------------------------------------------
def _invout_mvd_kernel(feats_ref, xyz_ref, w1_ref, b1_ref, w2_ref, b2_ref,
                       wxyz_ref, wfeat_ref, be_ref, out_ref):
    na, _, tp = feats_ref.shape
    f32 = jnp.float32
    mx = feats_ref.dtype                 # MXU streaming dtype (bf16 by default)

    w1, b1 = w1_ref[...], b1_ref[...]
    w2, b2 = w2_ref[...], b2_ref[...]

    # Per-anchor slabs.  The `mx` copies feed the MXU directly; the f32 copies
    # feed the element-wise pooling math (v5e has no bf16 VPU/EUP).
    fa = [feats_ref[a] for a in range(na)]          # na x (c_in, tp), mx dtype
    fa32 = [x.astype(f32) for x in fa]

    # Attention MLP batched across anchors: anchors sit side by side on the
    # lane axis, so the two 1x1 convs are TWO matmuls per grid step.
    if na > 1 and tp % 128 == 0:
        feats_all = jnp.concatenate(fa, axis=-1)    # (c_in, na*tp)
        h = jnp.maximum(
            jnp.dot(w1, feats_all, preferred_element_type=f32) + b1, 0.0)
        logits_all = jnp.dot(w2, h.astype(mx), preferred_element_type=f32) + b2
        # tp is a multiple of 128 -> static lane slices are free.
        logits = [logits_all[:, a * tp:(a + 1) * tp] for a in range(na)]
    else:                                           # tiny-block fallback path
        def mlp(x):
            h = jnp.maximum(
                jnp.dot(w1, x, preferred_element_type=f32) + b1, 0.0)
            return jnp.dot(w2, h.astype(mx), preferred_element_type=f32) + b2
        logits = [mlp(x) for x in fa]

    # Softmax over the anchor axis + attention pooling.  The block is fully
    # VMEM resident, so a plain softmax (one max, na exps, one sum) is used
    # instead of the online/flash form -- no running-rescale corrections.
    m = logits[0]
    for a in range(1, na):
        m = jnp.maximum(m, logits[a])
    z = jnp.zeros_like(m)
    acc = jnp.zeros_like(m)
    for a in range(na):
        e = jnp.exp(logits[a] - m)
        z = z + e
        acc = acc + fa32[a] * e
    pooled = acc / z                                # (c_in, tp)

    # PointnetSO3Conv_nomax (na == 1 input branch): 1x1 embed conv applied to
    # concat([xyz, pooled]) -- expressed with the split weight so no sublane
    # concat is needed.
    y = (jnp.dot(wxyz_ref[...], xyz_ref[...], preferred_element_type=f32)
         + jnp.dot(wfeat_ref[...], pooled.astype(mx), preferred_element_type=f32)
         + be_ref[...])                             # (c_out, tp)

    # F.normalize(p=2) over channels: one rsqrt on a (1, tp) row + broadcast
    # multiply.  rsqrt(max(ss, 1e-24)) == 1 / max(||y||, 1e-12) (F.normalize eps).
    sumsq = jnp.sum(y * y, axis=0, keepdims=True)
    inv = lax.rsqrt(jnp.maximum(sumsq, f32(1e-24)))
    out_ref[...] = y * inv


# ---------------------------------------------------------------------------
# Generation-aware tile picker.
# ---------------------------------------------------------------------------
def _vmem_budget():
    cap = 64 << 20                       # conservative default (v7x per-TC VMEM)
    try:
        cap = int(getattr(pltpu.get_tpu_info(), "vmem_capacity_bytes", cap))
    except Exception:
        pass
    budget = min(cap // 2, 48 << 20)     # per-step working-set cap (v7x headroom)
    limit = int(max(32 << 20, min(int(cap * 0.85), budget + (16 << 20))))
    return budget, limit


def _pick_pixel_tile(n_pix, na, c_in, c_out, bytes_in):
    """Lane tile over the flattened (batch*point) axis; returns (tp, n_pad, limit)."""
    budget, vmem_limit = _vmem_budget()
    if n_pix <= 128:                     # tiny problems: one full-dim block
        return n_pix, n_pix, vmem_limit
    n_pad = ((n_pix + 127) // 128) * 128

    def footprint(tp):
        # double-buffered streamed slabs (feats + xyz in, f32 out back)
        stream = 2 * tp * (na * c_in * bytes_in + 3 * bytes_in + c_out * 4)
        # in-kernel temporaries (concat slab, h, logits, f32 feats, pool state)
        interm = tp * 4 * (4 * na * c_in + 6 * c_in + 3 * c_out)
        weights = 2 * 4 * (2 * c_in * c_in + 2 * c_in + c_out * (4 + c_in))
        return stream + interm + weights

    tp = 128
    for cand in (2048, 1024, 512, 256, 128):
        if n_pad % cand == 0 and footprint(cand) <= budget:
            tp = cand
            break
    # keep >= 2 grid steps so both TensorCores get work on 2-TC chips (v7x)
    while n_pad // tp < 2 and tp >= 256:
        tp //= 2
    return tp, n_pad, vmem_limit


# ---------------------------------------------------------------------------
# pallas_call wrapper on the pre-laid-out (lane-dense) inputs.
# ---------------------------------------------------------------------------
def invout_mvd_nomax_pallas(feats_s, xyz_s, w1, b1, w2, b2, w_xyz, w_feat, b_e):
    """feats_s: (na, c_in, n_pix); xyz_s: (3, n_pix). Returns (c_out, n_pix) f32."""
    na, c_in, n_pix = feats_s.shape
    c_out = w_xyz.shape[0]
    mx = feats_s.dtype
    f32 = jnp.float32
    tp, n_pad, vmem_limit = _pick_pixel_tile(n_pix, na, c_in, c_out,
                                             jnp.dtype(mx).itemsize)
    if n_pad != n_pix:
        feats_s = jnp.pad(feats_s, ((0, 0), (0, 0), (0, n_pad - n_pix)))
        xyz_s = jnp.pad(xyz_s, ((0, 0), (0, n_pad - n_pix)))

    grid_spec = pltpu.PrefetchScalarGridSpec(
        num_scalar_prefetch=0,
        grid=(n_pad // tp,),
        in_specs=[
            # streamed per-block slabs: pixels (= batch*point) on the lane axis
            pl.BlockSpec((na, c_in, tp), lambda i: (0, 0, i)),
            pl.BlockSpec((3, tp), lambda i: (0, i)),
            # weights / biases: constant block index -> stay VMEM resident
            pl.BlockSpec((c_in, c_in), lambda i: (0, 0)),
            pl.BlockSpec((c_in, 1), lambda i: (0, 0)),
            pl.BlockSpec((c_in, c_in), lambda i: (0, 0)),
            pl.BlockSpec((c_in, 1), lambda i: (0, 0)),
            pl.BlockSpec((c_out, 3), lambda i: (0, 0)),
            pl.BlockSpec((c_out, c_in), lambda i: (0, 0)),
            pl.BlockSpec((c_out, 1), lambda i: (0, 0)),
        ],
        out_specs=pl.BlockSpec((c_out, tp), lambda i: (0, i)),
    )

    y = pl.pallas_call(
        _invout_mvd_kernel,
        out_shape=jax.ShapeDtypeStruct((c_out, n_pad), f32),
        grid_spec=grid_spec,
        compiler_params=pltpu.CompilerParams(
            dimension_semantics=("parallel",),
            vmem_limit_bytes=vmem_limit),
    )(feats_s, xyz_s,
      w1.astype(mx), b1.reshape(c_in, 1).astype(f32),
      w2.astype(mx), b2.reshape(c_in, 1).astype(f32),
      w_xyz.astype(mx), w_feat.astype(mx), b_e.reshape(c_out, 1).astype(f32))
    return y[:, :n_pix] if n_pad != n_pix else y


# ---------------------------------------------------------------------------
# PyTorch-layout entry point: layout plumbing (transpose fused with the bf16
# downcast) around the fused kernel.
# ---------------------------------------------------------------------------
def invout_block_mvd_nomax(xyz, feats, w1, b1, w2, b2, w_embed, b_embed,
                           stream_dtype=jnp.bfloat16):
    # xyz: (nb, 3, np); feats: (nb, c_in, np, na); w_embed: (c_out, 3 + c_in)
    nb, c_in, npnt, na = feats.shape
    c_out = w_embed.shape[0]
    n_pix = nb * npnt
    # Single fused layout pass over feats: (nb,c_in,np,na) -> (na,c_in,nb*np)
    # with the bf16 downcast folded in (the rewrite pass writes half the bytes).
    feats_s = jnp.transpose(feats, (3, 1, 0, 2)).reshape(na, c_in, n_pix)
    feats_s = feats_s.astype(stream_dtype)
    xyz_s = jnp.transpose(xyz, (1, 0, 2)).reshape(3, n_pix).astype(stream_dtype)
    w_xyz, w_feat = w_embed[:, :3], w_embed[:, 3:]   # split 1x1 conv == concat
    y = invout_mvd_nomax_pallas(feats_s, xyz_s, w1, b1, w2, b2,
                                w_xyz, w_feat, b_embed)           # (c_out, nb*np)
    out = jnp.transpose(y.reshape(c_out, nb, npnt), (1, 2, 0))    # (nb, np, c_out)
    return out, None


# ---------------------------------------------------------------------------
# Pure-JAX reference (mirrors the PyTorch forward).  `quant` optionally rounds
# the matmul operands through bf16 exactly where the kernel streams bf16.
# ---------------------------------------------------------------------------
def _reference(xyz, feats, w1, b1, w2, b2, w_embed, b_embed, quant=None):
    hp = lax.Precision.HIGHEST
    f32 = jnp.float32
    q = (lambda x: x.astype(quant).astype(f32)) if quant is not None else (lambda x: x)
    feats, xyz = q(feats), q(xyz)
    w1, w2, w_embed = q(w1), q(w2), q(w_embed)
    a = jnp.einsum('oc,bcpn->bopn', w1, feats, precision=hp) + b1[None, :, None, None]
    a = jnp.maximum(a, 0.0)
    a = jnp.einsum('oc,bcpn->bopn', w2, q(a), precision=hp) + b2[None, :, None, None]
    attn = jax.nn.softmax(a, axis=3)
    pooled = jnp.sum(feats * attn, axis=3)                        # (nb, c_in, np)
    g = jnp.concatenate([xyz, q(pooled)], axis=1)                 # (nb, 3+c_in, np)
    y = jnp.einsum('oc,bcp->bop', w_embed, g, precision=hp) + b_embed[None, :, None]
    out = jnp.transpose(y, (0, 2, 1))                             # (nb, np, c_out)
    nrm = jnp.sqrt(jnp.sum(out * out, axis=2, keepdims=True))
    return out / jnp.maximum(nrm, 1e-12), None


if __name__ == "__main__":
    def run_case(nb, c_in, npnt, na, c_out, seed):
        key = jax.random.PRNGKey(seed)
        kx, kf, k1, kb1, k2, kb2, ke, kbe = jax.random.split(key, 8)
        xyz = jax.random.normal(kx, (nb, 3, npnt), dtype=jnp.float32)
        feats = jax.random.normal(kf, (nb, c_in, npnt, na), dtype=jnp.float32)
        # attention_layer: Conv2d(c_in,c_in,1) -> ReLU -> Conv2d(c_in,c_in,1)
        w1 = 0.5 * jax.random.normal(k1, (c_in, c_in), dtype=jnp.float32)
        b1 = 0.1 * jax.random.normal(kb1, (c_in,), dtype=jnp.float32)
        w2 = 0.5 * jax.random.normal(k2, (c_in, c_in), dtype=jnp.float32)
        b2 = 0.1 * jax.random.normal(kb2, (c_in,), dtype=jnp.float32)
        # PointnetSO3Conv_nomax embed: Conv2d(c_in + 3, c_out, 1)
        w_embed = 0.2 * jax.random.normal(ke, (c_out, 3 + c_in), dtype=jnp.float32)
        b_embed = 0.1 * jax.random.normal(kbe, (c_out,), dtype=jnp.float32)

        out, aux = invout_block_mvd_nomax(xyz, feats, w1, b1, w2, b2,
                                          w_embed, b_embed)
        out = jax.block_until_ready(out)
        assert aux is None
        assert out.shape == (nb, npnt, c_out), out.shape
        assert bool(jnp.all(jnp.isfinite(out)))

        # Tight check: reference with the same bf16 rounding the kernel streams.
        ref_q, _ = _reference(xyz, feats, w1, b1, w2, b2, w_embed, b_embed,
                              quant=jnp.bfloat16)
        err_q = float(jnp.max(jnp.abs(out - ref_q)))
        assert err_q < 2e-3, ("quantized-reference mismatch", err_q)

        # Loose check: full-f32 PyTorch-semantics reference (bf16 streaming only
        # perturbs the L2-normalized output slightly).
        ref_f, _ = _reference(xyz, feats, w1, b1, w2, b2, w_embed, b_embed)
        err_f = float(jnp.max(jnp.abs(out - ref_f)))
        assert err_f < 1e-1, ("f32-reference mismatch", err_f)

    # Shapes implied by the module: batch=2, dim_in=4, points=16, kanchor=4,
    # mlp=[32] -> c_out=32.
    run_case(nb=2, c_in=4, npnt=16, na=4, c_out=32, seed=0)
    # Second case exercises 128-lane tiling, lane padding and a >=2-step
    # parallel grid (batched-anchor MLP path).
    run_case(nb=2, c_in=8, npnt=200, na=6, c_out=16, seed=1)
    print("KERNEL_OK")
</pallas_src>

<mosaic_0001>
module attributes {stable_mosaic.version = 11 : i64} {
  func.func @_invout_mvd_kernel(%arg0: i32, %arg1: memref<4x4x32xbf16, #tpu.memory_space<vmem>>, %arg2: memref<3x32xbf16, #tpu.memory_space<vmem>>, %arg3: memref<4x4xbf16, #tpu.memory_space<vmem>>, %arg4: memref<4x1xf32, #tpu.memory_space<vmem>>, %arg5: memref<4x4xbf16, #tpu.memory_space<vmem>>, %arg6: memref<4x1xf32, #tpu.memory_space<vmem>>, %arg7: memref<32x3xbf16, #tpu.memory_space<vmem>>, %arg8: memref<32x4xbf16, #tpu.memory_space<vmem>>, %arg9: memref<32x1xf32, #tpu.memory_space<vmem>>, %arg10: memref<32x32xf32, #tpu.memory_space<vmem>>) attributes {dimension_semantics = [#tpu.dimension_semantics<parallel>], iteration_bounds = array<i64: 1>, scalar_prefetch = 0 : i64, scratch_operands = 0 : i64, tpu.core_type = #tpu.core_type<tc>, window_params = [{transform_indices = @transform_0, window_bounds = array<i64: 4, 4, 32>}, {transform_indices = @transform_1, window_bounds = array<i64: 3, 32>}, {pipeline_mode = #tpu.pipeline_mode<synchronous>, transform_indices = @transform_2, window_bounds = array<i64: 4, 4>}, {pipeline_mode = #tpu.pipeline_mode<synchronous>, transform_indices = @transform_3, window_bounds = array<i64: 4, 1>}, {pipeline_mode = #tpu.pipeline_mode<synchronous>, transform_indices = @transform_4, window_bounds = array<i64: 4, 4>}, {pipeline_mode = #tpu.pipeline_mode<synchronous>, transform_indices = @transform_5, window_bounds = array<i64: 4, 1>}, {pipeline_mode = #tpu.pipeline_mode<synchronous>, transform_indices = @transform_6, window_bounds = array<i64: 32, 3>}, {pipeline_mode = #tpu.pipeline_mode<synchronous>, transform_indices = @transform_7, window_bounds = array<i64: 32, 4>}, {pipeline_mode = #tpu.pipeline_mode<synchronous>, transform_indices = @transform_8, window_bounds = array<i64: 32, 1>}, {transform_indices = @transform_9, window_bounds = array<i64: 32, 32>}]} {
    %c0 = arith.constant 0 : index
    %c0_0 = arith.constant 0 : index
    %0 = vector.load %arg3[%c0, %c0_0] : memref<4x4xbf16, #tpu.memory_space<vmem>>, vector<4x4xbf16>
    %c0_1 = arith.constant 0 : index
    %c0_2 = arith.constant 0 : index
    %1 = vector.load %arg4[%c0_1, %c0_2] : memref<4x1xf32, #tpu.memory_space<vmem>>, vector<4x1xf32>
    %c0_3 = arith.constant 0 : index
    %c0_4 = arith.constant 0 : index
    %2 = vector.load %arg5[%c0_3, %c0_4] : memref<4x4xbf16, #tpu.memory_space<vmem>>, vector<4x4xbf16>
    %c0_5 = arith.constant 0 : index
    %c0_6 = arith.constant 0 : index
    %3 = vector.load %arg6[%c0_5, %c0_6] : memref<4x1xf32, #tpu.memory_space<vmem>>, vector<4x1xf32>
    %c0_7 = arith.constant 0 : index
    %c0_8 = arith.constant 0 : index
    %c0_9 = arith.constant 0 : index
    %4 = vector.load %arg1[%c0_7, %c0_8, %c0_9] : memref<4x4x32xbf16, #tpu.memory_space<vmem>>, vector<1x4x32xbf16>
    %5 = vector.shape_cast %4 : vector<1x4x32xbf16> to vector<4x32xbf16>
    %c1 = arith.constant 1 : index
    %c0_10 = arith.constant 0 : index
    %c0_11 = arith.constant 0 : index
    %6 = vector.load %arg1[%c1, %c0_10, %c0_11] : memref<4x4x32xbf16, #tpu.memory_space<vmem>>, vector<1x4x32xbf16>
    %7 = vector.shape_cast %6 : vector<1x4x32xbf16> to vector<4x32xbf16>
    %c2 = arith.constant 2 : index
    %c0_12 = arith.constant 0 : index
    %c0_13 = arith.constant 0 : index
    %8 = vector.load %arg1[%c2, %c0_12, %c0_13] : memref<4x4x32xbf16, #tpu.memory_space<vmem>>, vector<1x4x32xbf16>
    %9 = vector.shape_cast %8 : vector<1x4x32xbf16> to vector<4x32xbf16>
    %c3 = arith.constant 3 : index
    %c0_14 = arith.constant 0 : index
    %c0_15 = arith.constant 0 : index
    %10 = vector.load %arg1[%c3, %c0_14, %c0_15] : memref<4x4x32xbf16, #tpu.memory_space<vmem>>, vector<1x4x32xbf16>
    %11 = vector.shape_cast %10 : vector<1x4x32xbf16> to vector<4x32xbf16>
    %12 = arith.extf %5 : vector<4x32xbf16> to vector<4x32xf32>
    %13 = arith.extf %7 : vector<4x32xbf16> to vector<4x32xf32>
    %14 = arith.extf %9 : vector<4x32xbf16> to vector<4x32xf32>
    %15 = arith.extf %11 : vector<4x32xbf16> to vector<4x32xf32>
    %cst = arith.constant dense<0.000000e+00> : vector<4x32xf32>
    %16 = tpu.matmul %0, %5, %cst {dimension_numbers = #tpu.dot_dimension_numbers<[1], [0], [0], [1], [0, 0, 1, 1], [], []>} : vector<4x4xbf16>, vector<4x32xbf16>, vector<4x32xf32> -> vector<4x32xf32>
    %17 = vector.broadcast %1 : vector<4x1xf32> to vector<4x32xf32>
    %18 = arith.addf %16, %17 : vector<4x32xf32>
    %cst_16 = arith.constant 0.000000e+00 : f32
    %19 = vector.broadcast %cst_16 : f32 to vector<4x32xf32>
    %20 = arith.maximumf %18, %19 : vector<4x32xf32>
    %21 = arith.truncf %20 : vector<4x32xf32> to vector<4x32xbf16>
    %cst_17 = arith.constant dense<0.000000e+00> : vector<4x32xf32>
    %22 = tpu.matmul %2, %21, %cst_17 {dimension_numbers = #tpu.dot_dimension_numbers<[1], [0], [0], [1], [0, 0, 1, 1], [], []>} : vector<4x4xbf16>, vector<4x32xbf16>, vector<4x32xf32> -> vector<4x32xf32>
    %23 = vector.broadcast %3 : vector<4x1xf32> to vector<4x32xf32>
    %24 = arith.addf %22, %23 : vector<4x32xf32>
    %cst_18 = arith.constant dense<0.000000e+00> : vector<4x32xf32>
    %25 = tpu.matmul %0, %7, %cst_18 {dimension_numbers = #tpu.dot_dimension_numbers<[1], [0], [0], [1], [0, 0, 1, 1], [], []>} : vector<4x4xbf16>, vector<4x32xbf16>, vector<4x32xf32> -> vector<4x32xf32>
    %26 = vector.broadcast %1 : vector<4x1xf32> to vector<4x32xf32>
    %27 = arith.addf %25, %26 : vector<4x32xf32>
    %cst_19 = arith.constant 0.000000e+00 : f32
    %28 = vector.broadcast %cst_19 : f32 to vector<4x32xf32>
    %29 = arith.maximumf %27, %28 : vector<4x32xf32>
    %30 = arith.truncf %29 : vector<4x32xf32> to vector<4x32xbf16>
    %cst_20 = arith.constant dense<0.000000e+00> : vector<4x32xf32>
    %31 = tpu.matmul %2, %30, %cst_20 {dimension_numbers = #tpu.dot_dimension_numbers<[1], [0], [0], [1], [0, 0, 1, 1], [], []>} : vector<4x4xbf16>, vector<4x32xbf16>, vector<4x32xf32> -> vector<4x32xf32>
    %32 = vector.broadcast %3 : vector<4x1xf32> to vector<4x32xf32>
    %33 = arith.addf %31, %32 : vector<4x32xf32>
    %cst_21 = arith.constant dense<0.000000e+00> : vector<4x32xf32>
    %34 = tpu.matmul %0, %9, %cst_21 {dimension_numbers = #tpu.dot_dimension_numbers<[1], [0], [0], [1], [0, 0, 1, 1], [], []>} : vector<4x4xbf16>, vector<4x32xbf16>, vector<4x32xf32> -> vector<4x32xf32>
    %35 = vector.broadcast %1 : vector<4x1xf32> to vector<4x32xf32>
    %36 = arith.addf %34, %35 : vector<4x32xf32>
    %cst_22 = arith.constant 0.000000e+00 : f32
    %37 = vector.broadcast %cst_22 : f32 to vector<4x32xf32>
    %38 = arith.maximumf %36, %37 : vector<4x32xf32>
    %39 = arith.truncf %38 : vector<4x32xf32> to vector<4x32xbf16>
    %cst_23 = arith.constant dense<0.000000e+00> : vector<4x32xf32>
    %40 = tpu.matmul %2, %39, %cst_23 {dimension_numbers = #tpu.dot_dimension_numbers<[1], [0], [0], [1], [0, 0, 1, 1], [], []>} : vector<4x4xbf16>, vector<4x32xbf16>, vector<4x32xf32> -> vector<4x32xf32>
    %41 = vector.broadcast %3 : vector<4x1xf32> to vector<4x32xf32>
    %42 = arith.addf %40, %41 : vector<4x32xf32>
    %cst_24 = arith.constant dense<0.000000e+00> : vector<4x32xf32>
    %43 = tpu.matmul %0, %11, %cst_24 {dimension_numbers = #tpu.dot_dimension_numbers<[1], [0], [0], [1], [0, 0, 1, 1], [], []>} : vector<4x4xbf16>, vector<4x32xbf16>, vector<4x32xf32> -> vector<4x32xf32>
    %44 = vector.broadcast %1 : vector<4x1xf32> to vector<4x32xf32>
    %45 = arith.addf %43, %44 : vector<4x32xf32>
    %cst_25 = arith.constant 0.000000e+00 : f32
    %46 = vector.broadcast %cst_25 : f32 to vector<4x32xf32>
    %47 = arith.maximumf %45, %46 : vector<4x32xf32>
    %48 = arith.truncf %47 : vector<4x32xf32> to vector<4x32xbf16>
    %cst_26 = arith.constant dense<0.000000e+00> : vector<4x32xf32>
    %49 = tpu.matmul %2, %48, %cst_26 {dimension_numbers = #tpu.dot_dimension_numbers<[1], [0], [0], [1], [0, 0, 1, 1], [], []>} : vector<4x4xbf16>, vector<4x32xbf16>, vector<4x32xf32> -> vector<4x32xf32>
    %50 = vector.broadcast %3 : vector<4x1xf32> to vector<4x32xf32>
    %51 = arith.addf %49, %50 : vector<4x32xf32>
    %52 = arith.maximumf %24, %33 : vector<4x32xf32>
    %53 = arith.maximumf %52, %42 : vector<4x32xf32>
    %54 = arith.maximumf %53, %51 : vector<4x32xf32>
    %cst_27 = arith.constant 0.000000e+00 : f32
    %55 = vector.broadcast %cst_27 : f32 to vector<4x32xf32>
    %cst_28 = arith.constant 0.000000e+00 : f32
    %56 = vector.broadcast %cst_28 : f32 to vector<4x32xf32>
    %57 = arith.subf %24, %54 : vector<4x32xf32>
    %58 = math.exp %57 : vector<4x32xf32>
    %59 = arith.addf %55, %58 : vector<4x32xf32>
    %60 = arith.mulf %12, %58 : vector<4x32xf32>
    %61 = arith.addf %56, %60 : vector<4x32xf32>
    %62 = arith.subf %33, %54 : vector<4x32xf32>
    %63 = math.exp %62 : vector<4x32xf32>
    %64 = arith.addf %59, %63 : vector<4x32xf32>
    %65 = arith.mulf %13, %63 : vector<4x32xf32>
    %66 = arith.addf %61, %65 : vector<4x32xf32>
    %67 = arith.subf %42, %54 : vector<4x32xf32>
    %68 = math.exp %67 : vector<4x32xf32>
    %69 = arith.addf %64, %68 : vector<4x32xf32>
    %70 = arith.mulf %14, %68 : vector<4x32xf32>
    %71 = arith.addf %66, %70 : vector<4x32xf32>
    %72 = arith.subf %51, %54 : vector<4x32xf32>
    %73 = math.exp %72 : vector<4x32xf32>
    %74 = arith.addf %69, %73 : vector<4x32xf32>
    %75 = arith.mulf %15, %73 : vector<4x32xf32>
    %76 = arith.addf %71, %75 : vector<4x32xf32>
    %77 = arith.divf %76, %74 : vector<4x32xf32>
    %c0_29 = arith.constant 0 : index
    %c0_30 = arith.constant 0 : index
    %78 = vector.load %arg7[%c0_29, %c0_30] : memref<32x3xbf16, #tpu.memory_space<vmem>>, vector<32x3xbf16>
    %c0_31 = arith.constant 0 : index
    %c0_32 = arith.constant 0 : index
    %79 = vector.load %arg2[%c0_31, %c0_32] : memref<3x32xbf16, #tpu.memory_space<vmem>>, vector<3x32xbf16>
    %cst_33 = arith.constant dense<0.000000e+00> : vector<32x32xf32>
    %80 = tpu.matmul %78, %79, %cst_33 {dimension_numbers = #tpu.dot_dimension_numbers<[1], [0], [0], [1], [0, 0, 1, 1], [], []>} : vector<32x3xbf16>, vector<3x32xbf16>, vector<32x32xf32> -> vector<32x32xf32>
    %c0_34 = arith.constant 0 : index
    %c0_35 = arith.constant 0 : index
    %81 = vector.load %arg8[%c0_34, %c0_35] : memref<32x4xbf16, #tpu.memory_space<vmem>>, vector<32x4xbf16>
    %82 = arith.truncf %77 : vector<4x32xf32> to vector<4x32xbf16>
    %cst_36 = arith.constant dense<0.000000e+00> : vector<32x32xf32>
    %83 = tpu.matmul %81, %82, %cst_36 {dimension_numbers = #tpu.dot_dimension_numbers<[1], [0], [0], [1], [0, 0, 1, 1], [], []>} : vector<32x4xbf16>, vector<4x32xbf16>, vector<32x32xf32> -> vector<32x32xf32>
    %84 = arith.addf %80, %83 : vector<32x32xf32>
    %c0_37 = arith.constant 0 : index
    %c0_38 = arith.constant 0 : index
    %85 = vector.load %arg9[%c0_37, %c0_38] : memref<32x1xf32, #tpu.memory_space<vmem>>, vector<32x1xf32>
    %86 = vector.broadcast %85 : vector<32x1xf32> to vector<32x32xf32>
    %87 = arith.addf %84, %86 : vector<32x32xf32>
    %88 = arith.mulf %87, %87 : vector<32x32xf32>
    %cst_39 = arith.constant dense<0.000000e+00> : vector<32xf32>
    %89 = vector.multi_reduction <add>, %88, %cst_39 [0] : vector<32x32xf32> to vector<32xf32>
    %90 = vector.shape_cast %89 : vector<32xf32> to vector<1x32xf32>
    %cst_40 = arith.constant 1.000000e-24 : f32
    %91 = vector.broadcast %cst_40 : f32 to vector<1x32xf32>
    %92 = arith.maximumf %90, %91 : vector<1x32xf32>
    %93 = math.rsqrt %92 : vector<1x32xf32>
    %94 = vector.broadcast %93 : vector<1x32xf32> to vector<32x32xf32>
    %95 = arith.mulf %87, %94 : vector<32x32xf32>
    %c0_41 = arith.constant 0 : index
    %c0_42 = arith.constant 0 : index
    %96 = vector.load %arg10[%c0_41, %c0_42] : memref<32x32xf32, #tpu.memory_space<vmem>>, vector<32x32xf32>
    tpu.vector_store %arg10[%c0_41, %c0_42], %95 {strides = array<i32>} : memref<32x32xf32, #tpu.memory_space<vmem>>, vector<32x32xf32>,
    return
  }
  func.func @transform_0(%arg0: i32) -> (i32, i32, i32) {
    %c0_i32 = arith.constant 0 : i32
    %c0_i32_0 = arith.constant 0 : i32
    %c0_i32_1 = arith.constant 0 : i32
    return %c0_i32, %c0_i32_0, %arg0 : i32, i32, i32
  }
  func.func @transform_1(%arg0: i32) -> (i32, i32) {
    %c0_i32 = arith.constant 0 : i32
    %c0_i32_0 = arith.constant 0 : i32
    return %c0_i32, %arg0 : i32, i32
  }
  func.func @transform_2(%arg0: i32) -> (i32, i32) {
    %c0_i32 = arith.constant 0 : i32
    %c0_i32_0 = arith.constant 0 : i32
    %c0_i32_1 = arith.constant 0 : i32
    return %c0_i32, %c0_i32_0 : i32, i32
  }
  func.func @transform_3(%arg0: i32) -> (i32, i32) {
    %c0_i32 = arith.constant 0 : i32
    %c0_i32_0 = arith.constant 0 : i32
    %c0_i32_1 = arith.constant 0 : i32
    return %c0_i32, %c0_i32_0 : i32, i32
  }
  func.func @transform_4(%arg0: i32) -> (i32, i32) {
    %c0_i32 = arith.constant 0 : i32
    %c0_i32_0 = arith.constant 0 : i32
    %c0_i32_1 = arith.constant 0 : i32
    return %c0_i32, %c0_i32_0 : i32, i32
  }
  func.func @transform_5(%arg0: i32) -> (i32, i32) {
    %c0_i32 = arith.constant 0 : i32
    %c0_i32_0 = arith.constant 0 : i32
    %c0_i32_1 = arith.constant 0 : i32
    return %c0_i32, %c0_i32_0 : i32, i32
  }
  func.func @transform_6(%arg0: i32) -> (i32, i32) {
    %c0_i32 = arith.constant 0 : i32
    %c0_i32_0 = arith.constant 0 : i32
    %c0_i32_1 = arith.constant 0 : i32
    return %c0_i32, %c0_i32_0 : i32, i32
  }
  func.func @transform_7(%arg0: i32) -> (i32, i32) {
    %c0_i32 = arith.constant 0 : i32
    %c0_i32_0 = arith.constant 0 : i32
    %c0_i32_1 = arith.constant 0 : i32
    return %c0_i32, %c0_i32_0 : i32, i32
  }
  func.func @transform_8(%arg0: i32) -> (i32, i32) {
    %c0_i32 = arith.constant 0 : i32
    %c0_i32_0 = arith.constant 0 : i32
    %c0_i32_1 = arith.constant 0 : i32
    return %c0_i32, %c0_i32_0 : i32, i32
  }
  func.func @transform_9(%arg0: i32) -> (i32, i32) {
    %c0_i32 = arith.constant 0 : i32
    %c0_i32_0 = arith.constant 0 : i32
    return %c0_i32, %arg0 : i32, i32
  }
}

</mosaic_0001>

<bundles_post_ra>
// kernel: tpu_custom_call.1
= control target key start
LH: loop header
LB: loop body
LE: loop exit
PB: predicated region body
PF: predicated region fallthrough
CT: control target
= control target key end

     0   :  { %vm58_vm0 = vcmask 1041408   ;;  %v825_v2 = vmov 0.0   ;;  %vm54_vm1 = vcmask 31744   ;;  %vm826_vm2 = vmmov 0   ;;  %s1014_s0 = inlined_call_operand.vmem [shape: bf16[4,4,32], index: 0, kind: input, shape index: {}]   ;;  %s1015_s1 = inlined_call_operand.vmem [shape: bf16[3,32], index: 1, kind: input, shape index: {}]   ;;  %s1016_s2 = inlined_call_operand.vmem [shape: bf16[4,4], index: 2, kind: input, shape index: {}]   ;;  %s1017_s3 = inlined_call_operand.vmem [shape: f32[4,1], index: 3, kind: input, shape index: {}]   ;;  %s1018_s4 = inlined_call_operand.vmem [shape: bf16[4,4], index: 4, kind: input, shape index: {}]   ;;  %s1019_s5 = inlined_call_operand.vmem [shape: f32[4,1], index: 5, kind: input, shape index: {}]   ;;  %s1020_s6 = inlined_call_operand.vmem [shape: bf16[32,3], index: 6, kind: input, shape index: {}]   ;;  %s1021_s7 = inlined_call_operand.vmem [shape: bf16[32,4], index: 7, kind: input, shape index: {}]   ;;  %s1022_s8 = inlined_call_operand.vmem [shape: f32[32,1], index: 8, kind: input, shape index: {}]   ;;  %s1023_s9 = inlined_call_operand.hbm [shape: f32[32,32], index: 9, kind: output, shape index: {}]  }
   0x1   :  { %v885_v0 = vld [vmem:[%s1014_s0] sm:$0x3]  ;;  %v890_v1 = vld [vmem:[%s1014_s0 + $0x2] sm:$0x3]  ;;  %711 = vmatprep.subr.bf16.mxu1 %v825_v2  ;;  %723 = vmatprep.subr.bf16.mxu0 %v825_v2  ;;  %v901_v5 = vld [vmem:[%s1014_s0 + $0x4] sm:$0x3] }
   0x2   :  { %v60_v3 = vsel %vm58_vm0, %v885_v0, 0  ;;  %v156_v4 = vsel %vm58_vm0, %v890_v1, 0  ;;  %v34_v6 = vld [vmem:[%s1016_s2] sm:$0x3]  ;;  %713 = vmatprep.mubr.msk.bf16.mxu1 %vm826_vm2, %v825_v2  ;;  %725 = vmatprep.mubr.msk.bf16.mxu0 %vm826_vm2, %v825_v2  ;;  %v244_v7 = vsel %vm58_vm0, %v901_v5, 0  ;;  %v827_v9 = vmov 0  }
   0x3   :  { %712 = vmatpush3.bf16.msra.mxu1 %v60_v3  ;;  %724 = vmatpush3.bf16.msra.mxu0 %v156_v4  ;;  %v35_v8 = vld [vmem:[%s1017_s3] sm:$0xf] }
   0x4   :  { %735 = vmatprep.subr.bf16.mxu0 %v825_v2  ;;  %783 = vset.pattern.permute.xlu0 %v827_v9 }
   0x6   :  { %714 = vmatmul.mubr.msk.bf16.vlgmr.msra.gmra.mrb[0].mxu1 %vm54_vm1, %v34_v6  ;;  %726 = vmatmul.mubr.msk.bf16.vlgmr.msra.gmra.mrb[0].mxu0 %vm54_vm1, %v34_v6 }
   0x7   :  { %736 = vmatpush3.bf16.msra.mxu0 %v244_v7  ;;  %737 = vmatprep.mubr.msk.bf16.mxu0 %vm826_vm2, %v825_v2 }
   0x8   :  { %14 = vsyncpa [#allocation3], 0  ;;  %747 = vmatprep.subr.bf16.mxu0 %v825_v2  ;;  %51 = vperm.xlu0 %783, %v35_v8   ;;  %v924_v10 = vld [vmem:[%s1014_s0 + $0x6] sm:$0x3]  ;;  %v37_v11 = vld [vmem:[%s1019_s5] sm:$0xf] }
   0x9   :  { %717 = vmatprep.subr.bf16.mxu1 %v825_v2  ;;  %719 = vmatprep.mubr.msk.bf16.mxu1 %vm826_vm2, %v825_v2  ;;  %v332_v12 = vsel %vm58_vm0, %v924_v10, 0  ;;  %v600_v13 = vld [vmem:[%s1022_s8 + $0x10] sm:$0xff]  ;;  %v36_v31 = vld [vmem:[%s1018_s4] sm:$0x3]  ;;  %v599_v50 = vld [vmem:[%s1022_s8 + $0x8] sm:$0xff]  ;;  %vm543_vm3 = vcmask 1040384  }
   0xa   :  { %784 = vset.pattern.permute.xlu1 %v827_v9  ;;  %v785_v48 = vld [vmem:[%s1021_s7] sm:$0xff]   ;;  %v601_v51 = vld [vmem:[%s1022_s8 + $0x18] sm:$0xff]  ;;  %vm536_vm4 = vcmask 23552   ;;  %vm630_vm5 = vcmask 261120  }
   0xb   :  { %v598_v49 = vld [vmem:[%s1022_s8] sm:$0xff] }
   0xc   :  { %106 = vperm.xlu0 %783, %v37_v11   ;;  %604 = vperm.xlu1 %784, %v598_v49   ;;  %v788_v49 = vld [vmem:[%s1020_s6 + $0x8] sm:$0xff]  }
   0xe   :  { %738 = vmatmul.mubr.msk.bf16.vlgmr.msra.gmra.mrb[4].mxu0 %vm54_vm1, %v34_v6 }
   0xf   :  { %748 = vmatpush3.bf16.msra.mxu0 %v332_v12  ;;  %749 = vmatprep.mubr.msk.bf16.mxu0 %vm826_vm2, %v825_v2 }
  0x10   :  { %614 = vperm.xlu0 %783, %v600_v13   ;;  %609 = vperm.xlu1 %784, %v599_v50  }
  0x14   :  { %619 = vperm.xlu1 %784, %v601_v51  }
  0x16   :  { %750 = vmatmul.mubr.msk.bf16.vlgmr.msra.gmra.mrb[8].mxu0 %vm54_vm1, %v34_v6 }
  0x17   :  { %761 = vmatprep.mubr.msk.bf16.mxu0 %vm54_vm1, %v785_v48  ;;  %v787_v48 = vld [vmem:[%s1020_s6] sm:$0xff]   ;;  %s829_s6 = smov [#allocation2]  }
  0x87   :  { %v52_v14 = vpop.permute.xlu0 %51 }
  0x8b   :  { %v107_v56 = vpop.permute.xlu0 %106  ;;  %v605_v50 = vpop.permute.xlu1 %604 }
  0x8f   :  { %v610_v51 = vpop.permute.xlu1 %609 }
  0xd9   :  { %v96_v15 = vpop.f32.mrb[0].mxu1  ;;  %v192_v16 = vpop.f32.mrb[0].mxu0 }
  0xda   :  { %v97_v17 = vadd.f32 %v96_v15, %v52_v14  ;;  %v193_v18 = vadd.f32 %v192_v16, %v52_v14  ;;  %v715_v19 = vpop.f32.mrb[1].mxu1  ;;  %v727_v20 = vpop.f32.mrb[1].mxu0 }
  0xdb   :  { %v99_v21 = vpop.f32.mrb[2].mxu1  ;;  %v195_v22 = vpop.f32.mrb[2].mxu0 }
  0xdc   :  { %v102_v23 = vmax.f32 %v97_v17, 0.0  ;;  %v198_v24 = vmax.f32 %v193_v18, 0.0  ;;  %v716_v25 = vpop.f32.mrb[3].mxu1  ;;  %v728_v26 = vpop.f32.mrb[3].mxu0 }
  0xdd   :  { %v46_v25 = vunpack.c.l.bf16 %v890_v1  ;;  %v47_v26 = vunpack.c.l.bf16 %v901_v5  ;;  %v828_v1 = vmov 65535  }
  0xde   :  { %v103_v27 = vpack.c.bf16 %v102_v23, %v102_v23  ;;  %v199_v28 = vpack.c.bf16 %v198_v24, %v198_v24  ;;  %v45_v24 = vunpack.c.l.bf16 %v885_v0  ;;  %v544_v5 = vsel %vm543_vm3, 4294967295, %v828_v1 }
  0xe0   :  { %v113_v29 = vsel %vm58_vm0, %v103_v27, 0  ;;  %v201_v36 = vsel %vm58_vm0, %v199_v28, 0  ;;  %v48_v28 = vunpack.c.l.bf16 %v924_v10  ;;  %v452_v10 = vld [vmem:[%s1015_s1] sm:$0x3] }
  0xe1   :  { %718 = vmatpush3.bf16.msra.mxu1 %v113_v29  ;;  %v280_v30 = vpop.f32.mrb[4].mxu0 }
  0xe2   :  { %v281_v32 = vadd.f32 %v280_v30, %v52_v14  ;;  %729 = vmatprep.subr.bf16.mxu1 %v825_v2  ;;  %v739_v33 = vpop.f32.mrb[5].mxu0 }
  0xe3   :  { %v283_v34 = vpop.f32.mrb[6].mxu0 }
  0xe4   :  { %v286_v35 = vmax.f32 %v281_v32, 0.0  ;;  %720 = vmatmul.mubr.msk.bf16.vlgmr.msra.gmra.mrb[4].mxu1 %vm54_vm1, %v36_v31  ;;  %v740_v37 = vpop.f32.mrb[7].mxu0 }
  0xe5   :  { %730 = vmatpush3.bf16.msra.mxu1 %v201_v36  ;;  %731 = vmatprep.mubr.msk.bf16.mxu1 %vm826_vm2, %v825_v2 }
  0xe6   :  { %741 = vmatprep.subr.bf16.mxu1 %v825_v2  ;;  %v287_v38 = vpack.c.bf16 %v286_v35, %v286_v35 }
  0xe8   :  { %v289_v44 = vsel %vm58_vm0, %v287_v38, 0 }
  0xe9   :  { %v368_v39 = vpop.f32.mrb[8].mxu0 }
  0xea   :  { %v369_v40 = vadd.f32 %v368_v39, %v52_v14  ;;  %v751_v41 = vpop.f32.mrb[9].mxu0 }
  0xeb   :  { %v371_v42 = vpop.f32.mrb[10].mxu0 }
  0xec   :  { %v374_v43 = vmax.f32 %v369_v40, 0.0  ;;  %732 = vmatmul.mubr.msk.bf16.vlgmr.msra.gmra.mrb[8].mxu1 %vm54_vm1, %v36_v31  ;;  %v752_v45 = vpop.f32.mrb[11].mxu0  ;;  %v545_v42 = vsel %vm58_vm0, %v544_v5, 0 }
  0xed   :  { %742 = vmatpush3.bf16.msra.mxu1 %v289_v44  ;;  %743 = vmatprep.mubr.msk.bf16.mxu1 %vm826_vm2, %v825_v2  ;;  %v547_v45 = vand.u32 %v545_v42, %v452_v10 }
  0xee   :  { %753 = vmatprep.subr.bf16.mxu1 %v825_v2  ;;  %v375_v46 = vpack.c.bf16 %v374_v43, %v374_v43 }
  0xf0   :  { %v377_v47 = vsel %vm58_vm0, %v375_v46, 0 }
  0xf4   :  { %744 = vmatmul.mubr.msk.bf16.vlgmr.msra.gmra.mrb[12].mxu1 %vm54_vm1, %v36_v31 }
  0xf5   :  { %754 = vmatpush3.bf16.msra.mxu1 %v377_v47  ;;  %755 = vmatprep.mubr.msk.bf16.mxu1 %vm826_vm2, %v825_v2  ;;  %v786_v47 = vld [vmem:[%s1021_s7 + $0x8] sm:$0xff]   ;;  %s659_s7 = sshll.u32 %s829_s6, 4  ;;  %s660_s7 = int_to_ptr.vmem [resolvable:$true] %s659_s7 }
  0xf6   :  { %s801_s15 = scalar_lea.vmem %s660_s7, 512  ;;  %p806_p1 = scmp.lt.s32.totalorder %s660_s7, %s660_s7 }
  0xf7   :  { %p802_p0 = scmp.ne.s32.totalorder %s660_s7, %s801_s15  ;;  %p807_p2 = scmp.lt.s32.totalorder %s801_s15, %s801_s15 }
  0xf9   :  { %p808_p3 = por %p807_p2, %p806_p1 }
  0xfb   :  { %p809_p4 = pnand %p808_p3, %p802_p0 }
  0xfc   :  { %756 = vmatmul.mubr.msk.bf16.vlgmr.msra.gmra.mrb[16].mxu1 %vm54_vm1, %v36_v31 }
 0x1b7   :  { %v149_v52 = vpop.f32.mrb[4].mxu1 }
 0x1b8   :  { %v721_v53 = vpop.f32.mrb[5].mxu1  ;;  %v150_v58 = vadd.f32 %v149_v52, %v107_v56 }
 0x1b9   :  { %v152_v54 = vpop.f32.mrb[6].mxu1  ;;  %v615_v53 = vpop.permute.xlu0 %614 }
 0x1ba   :  { %v722_v55 = vpop.f32.mrb[7].mxu1 }
 0x1bf   :  { %v237_v57 = vpop.f32.mrb[8].mxu1 }
 0x1c0   :  { %v238_v59 = vadd.f32 %v237_v57, %v107_v56  ;;  %v733_v60 = vpop.f32.mrb[9].mxu1 }
 0x1c1   :  { %v240_v61 = vpop.f32.mrb[10].mxu1 }
 0x1c2   :  { %v419_v62 = vmax.f32 %v150_v58, %v238_v59  ;;  %v734_v63 = vpop.f32.mrb[11].mxu1 }
 0x1c7   :  { %v325_v2 = vpop.f32.mrb[12].mxu1 }
 0x1c8   :  { %v326_v3 = vadd.f32 %v325_v2, %v107_v56  ;;  %v745_v4 = vpop.f32.mrb[13].mxu1 }
 0x1c9   :  { %v328_v6 = vpop.f32.mrb[14].mxu1 }
 0x1ca   :  { %v420_v7 = vmax.f32 %v419_v62, %v326_v3  ;;  %v746_v8 = vpop.f32.mrb[15].mxu1 }
 0x1cf   :  { %v413_v9 = vpop.f32.mrb[16].mxu1 }
 0x1d0   :  { %v414_v11 = vadd.f32 %v413_v9, %v107_v56  ;;  %v757_v12 = vpop.f32.mrb[17].mxu1 }
 0x1d1   :  { %v416_v13 = vpop.f32.mrb[18].mxu1 }
 0x1d2   :  { %v421_v14 = vmax.f32 %v420_v7, %v414_v11  ;;  %v758_v15 = vpop.f32.mrb[19].mxu1 }
 0x1d4   :  { %v422_v16 = vsub.f32 %v150_v58, %v421_v14  ;;  %v428_v17 = vsub.f32 %v238_v59, %v421_v14  ;;  %v434_v18 = vsub.f32 %v326_v3, %v421_v14  ;;  %v440_v19 = vsub.f32 %v414_v11, %v421_v14  ;;  %v620_v58 = vpop.permute.xlu1 %619 }
 0x1d6   :  { %v423_v20 = vmul.f32 1.442695, %v422_v16  ;;  %v429_v21 = vmul.f32 1.442695, %v428_v17  ;;  %v435_v22 = vmul.f32 1.442695, %v434_v18 }
 0x1d7   :  { %v441_v23 = vmul.f32 1.442695, %v440_v19 }
 0x1d8   :  { %789 = vpow2.f32 %v423_v20 }
 0x1d9   :  { %791 = vpow2.f32 %v429_v21 }
 0x1da   :  { %793 = vpow2.f32 %v435_v22 }
 0x1db   :  { %795 = vpow2.f32 %v441_v23 }
 0x1e2   :  { %v790_v27 = vpop.eup %789 }
 0x1e3   :  { %v792_v29 = vpop.eup %791  ;;  %v426_v30 = vmul.f32 %v790_v27, %v45_v24 }
 0x1e4   :  { %v794_v31 = vpop.eup %793  ;;  %v431_v32 = vadd.f32 %v792_v29, %v790_v27  ;;  %v432_v33 = vmul.f32 %v792_v29, %v46_v25 }
 0x1e5   :  { %v796_v34 = vpop.eup %795  ;;  %v438_v35 = vmul.f32 %v794_v31, %v47_v26 }
 0x1e6   :  { %v437_v36 = vadd.f32 %v794_v31, %v431_v32  ;;  %v433_v37 = vadd.f32 %v432_v33, %v426_v30  ;;  %v444_v38 = vmul.f32 %v796_v34, %v48_v28 }
 0x1e8   :  { %v443_v39 = vadd.f32 %v796_v34, %v437_v36  ;;  %v439_v40 = vadd.f32 %v438_v35, %v433_v37 }
 0x1ea   :  { %797 = vrcp.f32 %v443_v39  ;;  %v445_v0 = vadd.f32 %v444_v38, %v439_v40 }
 0x1f4   :  { %v798_v41 = vpop.eup %797 }
 0x1f5   :  { %v447_v43 = vmul.f32 %v798_v41, %v445_v0 }
 0x1f7   :  { %v457_v44 = vpack.c.bf16 %v447_v43, %v447_v43 }
 0x1f9   :  { %775 = vmatprep.subr.msk.bf16.mxu0 %vm58_vm0, %v457_v44  ;;  %v475_v46 = vsel %vm58_vm0, %v457_v44, 0 }
 0x1fa   :  { %760 = vmatpush3.bf16.msra.mxu0 %v475_v46 }
 0x1fb   :  { %765 = vmatprep.subr.bf16.mxu0 %v547_v45 }
 0x1fd   :  { %762 = vmatmul.mubr.msk.bf16.vlgmr.msra.gmra.mrb[12].mxu0 %vm54_vm1, %v786_v47 }
 0x1fe   :  { %766 = vmatpush3.bf16.msra.mxu0 %v547_v45  ;;  %767 = vmatprep.mubr.msk.bf16.mxu0 %vm536_vm4, %v787_v48 }
 0x209   :  { %768 = vmatmul.mubr.msk.bf16.vlgmr.msra.gmra.mrb[12].mxu0 %vm536_vm4, %v788_v49 }
 0x2dc   :  { %v769_v52 = vpop.f32.mrb[12].mxu0 }
 0x2dd   :  { %v583_v54 = vpop.f32.mrb[13].mxu0  ;;  %v624_v55 = vadd.f32 %v769_v52, %v615_v53 }
 0x2de   :  { %v622_v56 = vadd.f32 %v605_v50, %v583_v54  ;;  %v770_v57 = vpop.f32.mrb[14].mxu0 }
 0x2df   :  { %v586_v59 = vpop.f32.mrb[15].mxu0  ;;  %v625_v61 = vadd.f32 %v770_v57, %v620_v58  ;;  %v628_v63 = vmul.f32 %v624_v55, %v624_v55 }
 0x2e0   :  { %v626_v60 = vmul.f32 %v622_v56, %v622_v56  ;;  %v623_v62 = vadd.f32 %v610_v51, %v586_v59 }
 0x2e1   :  { %v629_v4 = vmul.f32 %v625_v61, %v625_v61  ;;  %v634_v8 = vsel %vm630_vm5, %v628_v63, 0.0 }
 0x2e2   :  { %v627_v2 = vmul.f32 %v623_v62, %v623_v62  ;;  %v631_v3 = vsel %vm630_vm5, %v626_v60, 0.0 }
 0x2e3   :  { %v636_v11 = vsel %vm630_vm5, %v629_v4, 0.0 }
 0x2e4   :  { %v632_v6 = vsel %vm630_vm5, %v627_v2, 0.0 }
 0x2e5   :  { %v633_v7 = vadd.f32 %v632_v6, %v631_v3 }
 0x2e7   :  { %v635_v9 = vadd.f32 %v634_v8, %v633_v7 }
 0x2e9   :  { %v637_v12 = vadd.f32 %v636_v11, %v635_v9 }
 0x2eb   :  { %v638_v13 = vrot.slane %v637_v12, 4 }
 0x2ed   :  { %v639_v14 = vadd.f32 %v638_v13, %v637_v12 }
 0x2ef   :  { %v640_v15 = vrot.slane %v639_v14, 2 }
 0x2f1   :  { %v641_v16 = vadd.f32 %v640_v15, %v639_v14 }
 0x2f3   :  { %v642_v17 = vrot.slane %v641_v16, 1 }
 0x2f5   :  { %v643_v18 = vadd.f32 %v642_v17, %v641_v16 }
 0x2f7   :  { %v644_v19 = vmax.f32 %v643_v18, 1e-24 }
 0x2f9   :  { %799 = vrsqrt.f32 %v644_v19 }
 0x303   :  { %v800_v20 = vpop.eup %799 }
 0x304   :  { %v647_v21 = vmul.f32 %v800_v20, %v623_v62  ;;  %v646_v22 = vmul.f32 %v800_v20, %v622_v56  ;;  %v648_v23 = vmul.f32 %v800_v20, %v624_v55  ;;  %v649_v24 = vmul.f32 %v800_v20, %v625_v61 }
 0x306   :  { %651 = vst.msk [vmem:[#allocation2 + $0x8] sm:$0xff] %vm630_vm5, %v647_v21  ;;  %650 = vst.msk [vmem:[#allocation2] sm:$0xff] %vm630_vm5, %v646_v22 }
 0x307   :  { %652 = vst.msk [vmem:[#allocation2 + $0x10] sm:$0xff] %vm630_vm5, %v648_v23  ;;  %653 = vst.msk [vmem:[#allocation2 + $0x18] sm:$0xff] %vm630_vm5, %v649_v24 }
 0x308   :  { %812 = shalt.err (!%p809_p4)
}
 0x309   :  { %s813_s18 = scalar_lea.hbm %s1023_s9, 512 }
 0x30a   :  { %p814_p5 = scmp.ne.s32.totalorder %s1023_s9, %s813_s18  ;;  %p817_p6 = scmp.lt.u32.totalorder %s813_s18, %s1023_s9 }
 0x30c   :  { %p819_p7 = pnand %p817_p6, %p814_p5 }
 0x30e   :  { %822 = shalt.err (!%p819_p7)
}
 0x30f   :  { %s830_s21 = smov 128   ;;  %s831_s22 = smov 8  }
 0x310   :  { %665 = dma.vmem_to_hbm [thread:$0]  %s660_s7, 512, %s1023_s9, [#allocation3], %s830_s21, %s830_s21, %s831_s22  }
 0x311   :  { %823 = dma.done.wait [#allocation3], 512  }
 0x312   :  { %824 = vsyncadd [#allocation3], 4294966784 }
 0x313   :  { %669 = vsyncpa [#allocation3], 1 }

</bundles_post_ra>
